<compile_context>
chip_gen: v7x
topology: tpu7x:2x2x1
jax: 0.10.0
libtpu: 0.0.40
codegen_flags: <defaults>
</compile_context>

<pallas_src>
import functools
import math

import jax
import jax.numpy as jnp
from jax.experimental import pallas as pl
from jax.experimental.pallas import tpu as pltpu


# ---------------------------------------------------------------------------
# __init__-time buffer construction (plain JAX / Python glue)
# ---------------------------------------------------------------------------
def generate_tree_levels(depth):
    """Pre-order DFS depths of a full binary tree of the given depth."""
    def dfs(node_depth, current_depth):
        if node_depth == current_depth:
            return []
        left = dfs(node_depth + 1, current_depth)
        right = dfs(node_depth + 1, current_depth)
        return [node_depth] + left + right

    return jnp.asarray(dfs(0, depth), dtype=jnp.int32)


def build_pos_embedding(max_len, d_model, dtype=jnp.float32):
    """Reproduces the `pos_embedding` buffer from the PyTorch __init__.

    Returns a 2-D (max_len, d_model) table in the requested storage dtype
    (built once; the forward wrapper never slices or casts it per call).
    """
    depth = int(math.log2(max_len + 1))
    assert (1 << depth) - 1 == max_len, (
        f"HybridPositionalEmbeddings requires max_len == 2**k - 1, got {max_len}")
    depths = generate_tree_levels(depth).reshape(max_len, 1).astype(jnp.float32)

    den = jnp.exp(
        -jnp.arange(0, d_model, 2, dtype=jnp.float32) * math.log(10000.0) / d_model)
    pos = jnp.arange(0, max_len, dtype=jnp.float32).reshape(max_len, 1)

    # (The torch code swaps the *_depths / *_seq names when filling; since the
    # two tables are summed the mix-up is harmless.  Names here are literal.)
    pe_from_positions = jnp.zeros((max_len, d_model), jnp.float32)
    pe_from_depths = jnp.zeros((max_len, d_model), jnp.float32)
    pe_from_positions = pe_from_positions.at[:, 0::2].set(jnp.sin(pos * den))
    pe_from_positions = pe_from_positions.at[:, 1::2].set(jnp.cos(pos * den))
    pe_from_depths = pe_from_depths.at[:, 0::2].set(jnp.sin(depths * den))
    pe_from_depths = pe_from_depths.at[:, 1::2].set(jnp.cos(depths * den))

    return (pe_from_positions + pe_from_depths).astype(dtype)  # (max_len, D)


# ---------------------------------------------------------------------------
# Kernel: dense flattened tiles.
#   x_ref / o_ref : (ts*B, D)  -- full, unmasked sublane/lane streams
#   pos_ref       : (ts, D)    -- one copy of each positional row per tile
# ---------------------------------------------------------------------------
def _add_pos_kernel(x_ref, pos_ref, o_ref, *, batch):
    x = x_ref[...].astype(jnp.float32)
    pos = pos_ref[...].astype(jnp.float32)
    if batch > 1:
        # Sublane repeat: flattened row s*B + b needs pos row s.  This is a
        # broadcast + sublane reshape on the *small* pos tile (relayout path),
        # negligible next to the HBM-bound x/out streams.
        pos = jnp.repeat(pos, batch, axis=0)
    o_ref[...] = (x + pos).astype(o_ref.dtype)


def _pick_block_rows(S, B, D, itemsize, target_block_bytes, min_grid_steps):
    """Sequence-tile size: VMEM-budgeted, multiple of 8 sublanes, prefers a
    divisor of S (no ragged masked tail), capped so the grid has at least
    `min_grid_steps` steps (pipelining + v7x two-core sharding)."""
    rows = max(1, int(target_block_bytes) // max(1, B * D * itemsize))
    rows = min(rows, pl.cdiv(S, min_grid_steps))
    rows = min(rows, S)
    if rows < 8:
        # Problem too small to tile at sublane granularity: single full block.
        return S
    rows -= rows % 8
    r = rows
    while r >= 8 and S % r != 0:
        r -= 8
    return r if r >= 8 else rows


def hybrid_positional_embeddings_forward(
    token_embedding,
    pos_embedding,
    *,
    block_rows=None,
    target_block_bytes=4 << 20,   # ~4 MiB x-block; bump to ~8 MiB on v7x.
    min_grid_steps=4,
    vmem_limit_bytes=48 << 20,    # fits all gens: > v5e 16 MiB default scoped
                                  # limit, < v7x 64 MiB physical VMEM.
    donate_input=False,
):
    """token_embedding: (S, B, D); pos_embedding: (max_len, D) or (max_len, 1, D)."""
    S, B, D = token_embedding.shape
    dtype = token_embedding.dtype
    itemsize = jnp.dtype(dtype).itemsize

    # Accept either the torch-style (max_len, 1, D) buffer or the 2-D table.
    if pos_embedding.ndim == 3:
        pos = pos_embedding.reshape(pos_embedding.shape[0], pos_embedding.shape[-1])
    else:
        pos = pos_embedding
    max_len = pos.shape[0]
    assert pos.shape[-1] == D and max_len >= S

    if block_rows is None:
        ts = _pick_block_rows(S, B, D, itemsize, target_block_bytes, min_grid_steps)
    else:
        ts = int(min(block_rows, S))
        if ts != S and ts % 8 != 0:
            ts = (ts - ts % 8) if ts >= 8 else S  # keep the (8,128) block rule

    if ts % 8 != 0 and S != max_len:
        # Tiny-S corner case (single, non-8-aligned full block): slice pos so
        # its block equals the full array dims.  Per-call slice is acceptable
        # only in this corner; normal path passes the whole table untouched.
        pos = pos[:S]

    grid_len = pl.cdiv(S, ts)

    # Free view of the contiguous sequence-first array -> dense vreg tiles
    # regardless of B (no wasted sublanes / masked stores when B < 8).
    x_flat = token_embedding.reshape(S * B, D)

    kernel = functools.partial(_add_pos_kernel, batch=B)

    out_flat = pl.pallas_call(
        kernel,
        out_shape=jax.ShapeDtypeStruct((S * B, D), dtype),
        grid_spec=pltpu.PrefetchScalarGridSpec(
            num_scalar_prefetch=0,
            grid=(grid_len,),
            in_specs=[
                pl.BlockSpec((ts * B, D), lambda i: (i, 0)),  # dense x tile
                pl.BlockSpec((ts, D), lambda i: (i, 0)),      # pos rows, once/tile
            ],
            out_specs=pl.BlockSpec((ts * B, D), lambda i: (i, 0)),
        ),
        compiler_params=pltpu.CompilerParams(
            # Sequence tiles are independent -> shardable across v7x's two
            # TensorCores; harmless on single-TC v5e/v6e.
            dimension_semantics=("parallel",),
            vmem_limit_bytes=vmem_limit_bytes,
        ),
        input_output_aliases=({0: 0} if donate_input else {}),
    )(x_flat, pos)

    # Dropout: identity in eval mode.
    return out_flat.reshape(S, B, D)


# ---------------------------------------------------------------------------
# Main
# ---------------------------------------------------------------------------
if __name__ == "__main__":
    max_len = 127          # must be 2^k - 1 for the tree-depth buffer
    d_model = 32
    dropout_p = 0.1        # unused at eval time
    seq_len = 64
    batch = 2

    key = jax.random.PRNGKey(0)
    k_tok, k_emb1, k_emb2 = jax.random.split(key, 3)

    # Unused-in-forward learnable tables (nn.Embedding in __init__); shape
    # parity only, never read by forward().
    seq_pos_embeddings = jax.random.normal(k_emb1, (max_len, d_model), jnp.float32)
    depth_embeddings = jax.random.normal(k_emb2, (max_len, d_model), jnp.float32)
    del seq_pos_embeddings, depth_embeddings

    # Built ONCE at "init" in the storage dtype; forward passes the full table.
    pos_embedding = build_pos_embedding(max_len, d_model)          # (127, 32) f32
    token_embedding = jax.random.normal(k_tok, (seq_len, batch, d_model), jnp.float32)

    ref = token_embedding + pos_embedding[:seq_len][:, None, :]

    # Default (VMEM-budgeted, >=4-step grid) tiling.
    out = hybrid_positional_embeddings_forward(token_embedding, pos_embedding)
    out = jax.block_until_ready(out)
    assert out.shape == (seq_len, batch, d_model)
    assert jnp.allclose(out, ref, atol=1e-6, rtol=1e-6)

    # Explicit 16-row tiles (4 pipelined grid steps).
    out_tiled = hybrid_positional_embeddings_forward(
        token_embedding, pos_embedding, block_rows=16)
    out_tiled = jax.block_until_ready(out_tiled)
    assert jnp.allclose(out_tiled, ref, atol=1e-6, rtol=1e-6)

    # bf16 activations: halves HBM traffic; add is done in f32 in-kernel, so
    # it still tracks the fp32 torch reference closely.
    out_bf16 = hybrid_positional_embeddings_forward(
        token_embedding.astype(jnp.bfloat16), pos_embedding)
    out_bf16 = jax.block_until_ready(out_bf16)
    assert jnp.allclose(out_bf16.astype(jnp.float32), ref, atol=5e-2, rtol=5e-2)

    print("KERNEL_OK")
</pallas_src>

<mosaic_0001>
module attributes {stable_mosaic.version = 11 : i64} {
  func.func @_add_pos_kernel(%arg0: i32, %arg1: memref<32x32xf32, #tpu.memory_space<vmem>>, %arg2: memref<16x32xf32, #tpu.memory_space<vmem>>, %arg3: memref<32x32xf32, #tpu.memory_space<vmem>>) attributes {dimension_semantics = [#tpu.dimension_semantics<parallel>], iteration_bounds = array<i64: 4>, scalar_prefetch = 0 : i64, scratch_operands = 0 : i64, tpu.core_type = #tpu.core_type<tc>, window_params = [{transform_indices = @transform_0, window_bounds = array<i64: 32, 32>}, {transform_indices = @transform_1, window_bounds = array<i64: 16, 32>}, {transform_indices = @transform_2, window_bounds = array<i64: 32, 32>}]} {
    %c0 = arith.constant 0 : index
    %c0_0 = arith.constant 0 : index
    %0 = vector.load %arg1[%c0, %c0_0] : memref<32x32xf32, #tpu.memory_space<vmem>>, vector<32x32xf32>
    %c0_1 = arith.constant 0 : index
    %c0_2 = arith.constant 0 : index
    %1 = vector.load %arg2[%c0_1, %c0_2] : memref<16x32xf32, #tpu.memory_space<vmem>>, vector<16x32xf32>
    %2 = vector.shape_cast %1 : vector<16x32xf32> to vector<16x1x32xf32>
    %3 = vector.broadcast %2 : vector<16x1x32xf32> to vector<16x2x32xf32>
    %4 = vector.shape_cast %3 : vector<16x2x32xf32> to vector<32x32xf32>
    %5 = arith.addf %0, %4 : vector<32x32xf32>
    %c0_3 = arith.constant 0 : index
    %c0_4 = arith.constant 0 : index
    %6 = vector.load %arg3[%c0_3, %c0_4] : memref<32x32xf32, #tpu.memory_space<vmem>>, vector<32x32xf32>
    tpu.vector_store %arg3[%c0_3, %c0_4], %5 {strides = array<i32>} : memref<32x32xf32, #tpu.memory_space<vmem>>, vector<32x32xf32>,
    return
  }
  func.func @transform_0(%arg0: i32) -> (i32, i32) {
    %c0_i32 = arith.constant 0 : i32
    %c0_i32_0 = arith.constant 0 : i32
    return %arg0, %c0_i32 : i32, i32
  }
  func.func @transform_1(%arg0: i32) -> (i32, i32) {
    %c0_i32 = arith.constant 0 : i32
    %c0_i32_0 = arith.constant 0 : i32
    return %arg0, %c0_i32 : i32, i32
  }
  func.func @transform_2(%arg0: i32) -> (i32, i32) {
    %c0_i32 = arith.constant 0 : i32
    %c0_i32_0 = arith.constant 0 : i32
    return %arg0, %c0_i32 : i32, i32
  }
}

</mosaic_0001>

<bundles_post_ra>
// kernel: tpu_custom_call.1
= control target key start
LH: loop header
LB: loop body
LE: loop exit
PB: predicated region body
PF: predicated region fallthrough
CT: control target
= control target key end

     0   :  { %s536_s9 = smov 0   ;;  %s601_s0 = inlined_call_operand.vmem [shape: f32[128,32], index: 0, kind: input, shape index: {}]   ;;  %s602_s1 = inlined_call_operand.vmem [shape: f32[127,32], index: 1, kind: input, shape index: {}]   ;;  %s603_s2 = inlined_call_operand.vmem [shape: f32[128,32], index: 2, kind: output, shape index: {}]  }
   0x1 LB: > { %s488_s10 = sadd.s32 4294967295, %s517_s9   ;;  %p492_p0 = scmp.ge.s32.totalorder %s517_s9, 1  ;;  %s517_s9 = sphi %s536_s9, %s12_s9  }
   0x2   : > { %p124_p1 = scmp.lt.s32.totalorder %s517_s9, 5 }
   0x4   : > { %p125_p2 = pnand %p492_p0, %p124_p1 }
   0x5   : > { %s495_s11 = sshll.u32 (!%p125_p2), %s488_s10, 1  ;;  %v181_v0 = vlaneseq (!%p125_p2)  ;;  %v519_v1 = vmov (!%p125_p2), 1966171168   ;;  %v520_v5 = vmov (!%p125_p2), 1983009808   ;;  %s493_s12 = sshll.u32 (!%p125_p2), %s488_s10, 2 }
   0x6   : > { %128 = sbr.rel (%p125_p2) target bundleno = 45 (0x2d), region = 28  ;;  %p158_p3 = scmp.lt.s32.totalorder (!%p125_p2), %s495_s11, 15  ;;  %v179_v2 = vunpack.c.l.s4 (!%p125_p2), %v519_v1  ;;  %v342_v6 = vunpack.c.l.s4 (!%p125_p2), %v520_v5  ;;  %vm415_vm0 = vcmask (!%p125_p2), 261120  }
   0x7   : > { %v182_v3 = vshrl.u32 (!%p125_p2), %v181_v0, 7  ;;  %p152_p4 = scmp.lt.s32.totalorder (!%p125_p2), %s493_s12, 15 }
   0x8   : > { %v180_v4 = vunpack.c.0.s8 (!%p125_p2), %v179_v2  ;;  %v343_v10 = vunpack.c.0.s8 (!%p125_p2), %v342_v6 }
   0x9   : > { %v547_v9 = vsub.s32 (!%p125_p2), 0, %v182_v3 }
   0xa   : > { %v183_v7 = vsub.s32 (!%p125_p2), %v180_v4, %v182_v3  ;;  %v551_v20 = vsub.s32 (!%p125_p2), %v343_v10, %v182_v3 }
   0xd   : > { %s605_s11 = smov (!%p158_p3, %s495_s11), 15  ;;  %s607_s12 = smov (!%p152_p4, %s493_s12), 15 }
   0xe   : > { %s496_s13 = sshll.u32 %s605_s11, 3  ;;  %s494_s17 = sshll.u32 %s607_s12, 3 }
   0xf   : > { %s161_s16 = scalar_lea.vmem %s602_s1, %s496_s13  ;;  %s570_s20 = scalar_lea.vmem %s601_s0, %s494_s17 }
  0x10   : > { %v173_v8 = vld [vmem:[%s161_s16] sm:$0xff]  ;;  %v174_v11 = vld [vmem:[%s161_s16 + $0x8] sm:$0xff]  ;;  %v171_v1 = vld [vmem:[%s570_s20 + $0x10] sm:$0xff]  ;;  %s167_s23 = scalar_lea.vmem %s603_s2, %s494_s17 }
  0x11   : > { %v184_v12 = vrot.slane %v173_v8, %v183_v7  ;;  %v177_v13 = vcombine.high %v173_v8, %v173_v8  ;;  %v233_v14 = vrot.slane %v174_v11, %v183_v7  ;;  %v226_v15 = vcombine.high %v174_v11, %v174_v11  ;;  %v169_v58 = vld [vmem:[%s570_s20] sm:$0xff]  ;;  %v170_v2 = vld [vmem:[%s570_s20 + $0x8] sm:$0xff] }
  0x13   : > { %v192_v16 = vcombine.high %v184_v12, %v184_v12  ;;  %v200_v17 = vrot.slane %v184_v12, %v183_v7  ;;  %v191_v18 = vrot.slane %v177_v13, %v183_v7  ;;  %v241_v19 = vcombine.high %v233_v14, %v233_v14 }
  0x14   : > { %v249_v21 = vrot.slane %v233_v14, %v183_v7  ;;  %v240_v22 = vrot.slane %v226_v15, %v183_v7 }
  0x15   : > { %v214_v23 = vrot.slane %v192_v16, %v183_v7  ;;  %v222_v24 = vcombine.high %v200_v17, %v200_v17  ;;  %v278_v25 = vrot.slane %v200_v17, %v547_v9  ;;  %v193_v26 = vcombine.high %v191_v18, %v191_v18  ;;  %v172_v17 = vld [vmem:[%s570_s20 + $0x18] sm:$0xff] }
  0x16   : > { %v207_v27 = vrot.slane %v191_v18, %v183_v7  ;;  %v263_v28 = vrot.slane %v241_v19, %v183_v7  ;;  %v271_v29 = vcombine.high %v249_v21, %v249_v21  ;;  %v310_v30 = vrot.slane %v249_v21, %v547_v9 }
  0x17   : > { %v224_v31 = vcombine.high %v214_v23, %v214_v23  ;;  %v282_v32 = vrot.slane %v214_v23, %v547_v9  ;;  %v286_v33 = vrot.slane %v222_v24, %v547_v9  ;;  %v221_v34 = vrot.slane %v193_v26, %v183_v7 }
  0x18   : > { %v223_v35 = vcombine.high %v207_v27, %v207_v27  ;;  %v294_v36 = vrot.slane %v207_v27, %v547_v9  ;;  %v273_v37 = vcombine.high %v263_v28, %v263_v28  ;;  %v314_v38 = vrot.slane %v263_v28, %v547_v9 }
  0x19   : > { %v290_v39 = vrot.slane %v224_v31, %v547_v9  ;;  %v339_v40 = vcombine.low %v278_v25, %v282_v32  ;;  %v225_v41 = vcombine.high %v221_v34, %v221_v34  ;;  %v298_v42 = vrot.slane %v221_v34, %v547_v9 }
  0x1a   : > { %v302_v43 = vrot.slane %v223_v35, %v547_v9  ;;  %v318_v44 = vrot.slane %v271_v29, %v547_v9  ;;  %v322_v45 = vrot.slane %v273_v37, %v547_v9  ;;  %v373_v46 = vcombine.low %v310_v30, %v314_v38 }
  0x1b   : > { %v340_v47 = vcombine.low %v286_v33, %v290_v39  ;;  %v347_v48 = vrot.slane %v339_v40, %v551_v20  ;;  %v306_v49 = vrot.slane %v225_v41, %v547_v9  ;;  %v356_v50 = vcombine.low %v294_v36, %v298_v42 }
  0x1c   : > { %v374_v51 = vcombine.low %v318_v44, %v322_v45  ;;  %v381_v52 = vrot.slane %v373_v46, %v551_v20  ;;  %v242_v53 = vcombine.high %v240_v22, %v240_v22  ;;  %v256_v54 = vrot.slane %v240_v22, %v183_v7 }
  0x1d   : > { %v354_v55 = vrot.slane %v340_v47, %v551_v20  ;;  %v357_v56 = vcombine.low %v302_v43, %v306_v49  ;;  %v364_v57 = vrot.slane %v356_v50, %v551_v20 }
  0x1e   : > { %v388_v59 = vrot.slane %v374_v51, %v551_v20  ;;  %v270_v60 = vrot.slane %v242_v53, %v183_v7  ;;  %v272_v61 = vcombine.high %v256_v54, %v256_v54  ;;  %v326_v62 = vrot.slane %v256_v54, %v547_v9 }
  0x1f   : > { %v355_v63 = vcombine.low %v347_v48, %v354_v55  ;;  %v371_v0 = vrot.slane %v357_v56, %v551_v20 }
  0x20   : > { %v389_v3 = vcombine.low %v381_v52, %v388_v59  ;;  %v274_v4 = vcombine.high %v270_v60, %v270_v60  ;;  %v330_v5 = vrot.slane %v270_v60, %v547_v9  ;;  %v334_v6 = vrot.slane %v272_v61, %v547_v9 }
  0x21   : > { %v411_v7 = vadd.f32 %v355_v63, %v169_v58  ;;  %v372_v8 = vcombine.low %v364_v57, %v371_v0 }
  0x22   : > { %v413_v10 = vadd.f32 %v389_v3, %v171_v1  ;;  %v338_v11 = vrot.slane %v274_v4, %v547_v9  ;;  %v390_v12 = vcombine.low %v326_v62, %v330_v5 }
  0x23   : > { %416 = vst.msk [vmem:[%s167_s23] sm:$0xff] %vm415_vm0, %v411_v7  ;;  %v412_v13 = vadd.f32 %v372_v8, %v170_v2 }
  0x24   : > { %418 = vst.msk [vmem:[%s167_s23 + $0x10] sm:$0xff] %vm415_vm0, %v413_v10  ;;  %v391_v14 = vcombine.low %v334_v6, %v338_v11  ;;  %v398_v15 = vrot.slane %v390_v12, %v551_v20 }
  0x25   : > { %417 = vst.msk [vmem:[%s167_s23 + $0x8] sm:$0xff] %vm415_vm0, %v412_v13 }
  0x26   : > { %v405_v16 = vrot.slane %v391_v14, %v551_v20 }
  0x28   : > { %v406_v18 = vcombine.low %v398_v15, %v405_v16 }
  0x2a   : > { %v414_v19 = vadd.f32 %v406_v18, %v172_v17 }
  0x2c   : > { %419 = vst.msk [vmem:[%s167_s23 + $0x18] sm:$0xff] %vm415_vm0, %v414_v19 }
  0x2d PF: > { %s12_s9 = sadd.s32 1, %s517_s9  }
  0x2e   : > { %p9_p5 = scmp.ge.s32.totalorder %s12_s9, 6  }
  0x30   :  { %11 = sbr.rel (!%p9_p5) target bundleno = 1 (0x1), region = 61 }

</bundles_post_ra>
